<compile_context>
chip_gen: v5e
topology: v5e:2x2
jax: 0.10.0
libtpu: 0.0.40
codegen_flags: <defaults>
</compile_context>

<pallas_src>
import jax
import jax.numpy as jnp
from jax.experimental import pallas as pl
from jax.experimental.pallas import tpu as pltpu  # noqa: F401  (TPU backend)


def downstream_kernel(x_ref, w1_ref, b_ref, w2_ref, o_ref):
    # Whole forward pass in one invocation: BN reduction + 2 MXU matmuls + relu.
    x = x_ref[...].astype(jnp.float32)                        # (B, F)
    inv_b = 1.0 / x.shape[0]                                  # static python float

    # --- BatchNorm1d train-mode stats (biased variance, eps=1e-5) ---
    mean = jnp.sum(x, axis=0, keepdims=True) * inv_b          # (1, F)
    xc = x - mean
    var = jnp.sum(xc * xc, axis=0, keepdims=True) * inv_b     # centered form
    x_hat = xc * jax.lax.rsqrt(var + 1e-5)                    # (B, F)
    # gamma/beta already folded into w1/b1 by prepare_params().

    # --- fc1 + relu ---
    h1 = jnp.dot(x_hat, w1_ref[...], preferred_element_type=jnp.float32)
    h1 = jnp.maximum(h1 + b_ref[0:1, :], 0.0)                 # (B, H)

    # --- fc2 + relu ---
    h2 = jnp.dot(h1, w2_ref[...], preferred_element_type=jnp.float32)
    h2 = jnp.maximum(h2 + b_ref[1:2, :], 0.0)                 # (B, H)

    o_ref[...] = h2.astype(o_ref.dtype)


def prepare_params(gamma, beta, w1, b1, w2, b2):
    """One-time parameter folding/packing (hoisted out of the per-call path).

    BN affine folded into fc1:  x_bn @ W1 + b1 = x_hat @ (gamma.T * W1) + (beta @ W1 + b1)
    Biases packed into one (2, H) operand: row 0 = folded b1, row 1 = b2.
    """
    w1f = gamma.reshape(-1, 1) * w1                           # (F, H)
    b1f = beta @ w1 + b1                                      # (1, H)
    bpk = jnp.concatenate([b1f, b2], axis=0)                  # (2, H)
    return (jnp.asarray(w1f, jnp.float32),
            jnp.asarray(bpk, jnp.float32),
            jnp.asarray(w2, jnp.float32))


def downstream_forward(x, w1f, bpk, w2):
    """Per-call path: one pallas_call, no parameter prep, no padding."""
    B, F = x.shape
    H = w1f.shape[1]

    # block_shape == full array shape -> legal regardless of (8,128) alignment,
    # and every operand is a single whole-array DMA.
    full = lambda shape: pl.BlockSpec(shape, lambda: tuple(0 for _ in shape))

    return pl.pallas_call(
        downstream_kernel,
        out_shape=jax.ShapeDtypeStruct((B, H), jnp.float32),
        grid=(),
        in_specs=[
            full((B, F)),        # x
            full((F, H)),        # fused w1 (gamma folded)
            full((2, H)),        # packed biases: row 0 = b1', row 1 = b2
            full((H, H)),        # w2 (unpadded)
        ],
        out_specs=full((B, H)),
    )(x, w1f, bpk, w2)


def downstream_model(x, gamma, beta, w1, b1, w2, b2):
    """Convenience one-shot entry point (prep + forward)."""
    w1f, bpk, w2f = prepare_params(gamma, beta, w1, b1, w2, b2)
    return downstream_forward(x, w1f, bpk, w2f)


def reference(x, gamma, beta, w1, b1, w2, b2):
    x = x.astype(jnp.float32)
    mean = jnp.mean(x, axis=0, keepdims=True)
    var = jnp.mean((x - mean) ** 2, axis=0, keepdims=True)
    x_bn = (x - mean) / jnp.sqrt(var + 1e-5) * gamma + beta
    h1 = jnp.maximum(x_bn @ w1 + b1, 0.0)
    h2 = jnp.maximum(h1 @ w2 + b2, 0.0)
    return h2


if __name__ == "__main__":
    batch = 8
    input_size = 32
    hidden_size = 32

    key = jax.random.PRNGKey(0)
    k_x, k_w1, k_b1, k_w2, k_b2, k_g, k_be = jax.random.split(key, 7)

    x = jax.random.normal(k_x, (batch, input_size), dtype=jnp.float32)

    # BatchNorm1d affine params (non-trivial values to exercise the folding).
    gamma = 1.0 + 0.1 * jax.random.normal(k_g, (1, input_size), dtype=jnp.float32)
    beta = 0.1 * jax.random.normal(k_be, (1, input_size), dtype=jnp.float32)

    # Linear layers, PyTorch-style uniform init, stored transposed as (in, out).
    bound1 = 1.0 / jnp.sqrt(input_size)
    w1 = jax.random.uniform(k_w1, (input_size, hidden_size),
                            minval=-bound1, maxval=bound1, dtype=jnp.float32)
    b1 = jax.random.uniform(k_b1, (1, hidden_size),
                            minval=-bound1, maxval=bound1, dtype=jnp.float32)

    bound2 = 1.0 / jnp.sqrt(hidden_size)
    w2 = jax.random.uniform(k_w2, (hidden_size, hidden_size),
                            minval=-bound2, maxval=bound2, dtype=jnp.float32)
    b2 = jax.random.uniform(k_b2, (1, hidden_size),
                            minval=-bound2, maxval=bound2, dtype=jnp.float32)

    # Steady-state usage pattern: prepare parameters once, reuse across calls.
    w1f, bpk, w2f = prepare_params(gamma, beta, w1, b1, w2, b2)
    w1f, bpk, w2f = jax.block_until_ready((w1f, bpk, w2f))

    out = downstream_forward(x, w1f, bpk, w2f)
    out = jax.block_until_ready(out)

    ref = reference(x, gamma, beta, w1, b1, w2, b2)
    assert out.shape == (batch, hidden_size)
    assert jnp.allclose(out, ref, atol=1e-4, rtol=1e-4), "mismatch vs reference"

    print("KERNEL_OK")
</pallas_src>

<mosaic_0001>
module attributes {stable_mosaic.version = 11 : i64} {
  func.func @downstream_kernel(%arg0: memref<8x32xf32, #tpu.memory_space<vmem>>, %arg1: memref<32x32xf32, #tpu.memory_space<vmem>>, %arg2: memref<2x32xf32, #tpu.memory_space<vmem>>, %arg3: memref<32x32xf32, #tpu.memory_space<vmem>>, %arg4: memref<8x32xf32, #tpu.memory_space<vmem>>) attributes {dimension_semantics = [], scalar_prefetch = 0 : i64, scratch_operands = 0 : i64, tpu.core_type = #tpu.core_type<tc>} {
    %c0 = arith.constant 0 : index
    %c0_0 = arith.constant 0 : index
    %0 = vector.load %arg0[%c0, %c0_0] : memref<8x32xf32, #tpu.memory_space<vmem>>, vector<8x32xf32>
    %cst = arith.constant dense<0.000000e+00> : vector<32xf32>
    %1 = vector.multi_reduction <add>, %0, %cst [0] : vector<8x32xf32> to vector<32xf32>
    %2 = vector.shape_cast %1 : vector<32xf32> to vector<1x32xf32>
    %cst_1 = arith.constant 1.250000e-01 : f32
    %3 = vector.broadcast %cst_1 : f32 to vector<1x32xf32>
    %4 = arith.mulf %2, %3 : vector<1x32xf32>
    %5 = vector.broadcast %4 : vector<1x32xf32> to vector<8x32xf32>
    %6 = arith.subf %0, %5 : vector<8x32xf32>
    %7 = arith.mulf %6, %6 : vector<8x32xf32>
    %cst_2 = arith.constant dense<0.000000e+00> : vector<32xf32>
    %8 = vector.multi_reduction <add>, %7, %cst_2 [0] : vector<8x32xf32> to vector<32xf32>
    %9 = vector.shape_cast %8 : vector<32xf32> to vector<1x32xf32>
    %cst_3 = arith.constant 1.250000e-01 : f32
    %10 = vector.broadcast %cst_3 : f32 to vector<1x32xf32>
    %11 = arith.mulf %9, %10 : vector<1x32xf32>
    %cst_4 = arith.constant 9.99999974E-6 : f32
    %12 = vector.broadcast %cst_4 : f32 to vector<1x32xf32>
    %13 = arith.addf %11, %12 : vector<1x32xf32>
    %14 = math.rsqrt %13 : vector<1x32xf32>
    %15 = vector.broadcast %14 : vector<1x32xf32> to vector<8x32xf32>
    %16 = arith.mulf %6, %15 : vector<8x32xf32>
    %c0_5 = arith.constant 0 : index
    %c0_6 = arith.constant 0 : index
    %17 = vector.load %arg1[%c0_5, %c0_6] : memref<32x32xf32, #tpu.memory_space<vmem>>, vector<32x32xf32>
    %cst_7 = arith.constant dense<0.000000e+00> : vector<8x32xf32>
    %18 = tpu.matmul %16, %17, %cst_7 {dimension_numbers = #tpu.dot_dimension_numbers<[1], [0], [0], [1], [0, 0, 1, 1], [], []>} : vector<8x32xf32>, vector<32x32xf32>, vector<8x32xf32> -> vector<8x32xf32>
    %c0_8 = arith.constant 0 : index
    %c0_9 = arith.constant 0 : index
    %19 = vector.load %arg2[%c0_8, %c0_9] : memref<2x32xf32, #tpu.memory_space<vmem>>, vector<1x32xf32>
    %20 = vector.broadcast %19 : vector<1x32xf32> to vector<8x32xf32>
    %21 = arith.addf %18, %20 : vector<8x32xf32>
    %cst_10 = arith.constant 0.000000e+00 : f32
    %22 = vector.broadcast %cst_10 : f32 to vector<8x32xf32>
    %23 = arith.maximumf %21, %22 : vector<8x32xf32>
    %c0_11 = arith.constant 0 : index
    %c0_12 = arith.constant 0 : index
    %24 = vector.load %arg3[%c0_11, %c0_12] : memref<32x32xf32, #tpu.memory_space<vmem>>, vector<32x32xf32>
    %cst_13 = arith.constant dense<0.000000e+00> : vector<8x32xf32>
    %25 = tpu.matmul %23, %24, %cst_13 {dimension_numbers = #tpu.dot_dimension_numbers<[1], [0], [0], [1], [0, 0, 1, 1], [], []>} : vector<8x32xf32>, vector<32x32xf32>, vector<8x32xf32> -> vector<8x32xf32>
    %c1 = arith.constant 1 : index
    %c0_14 = arith.constant 0 : index
    %26 = vector.load %arg2[%c1, %c0_14] : memref<2x32xf32, #tpu.memory_space<vmem>>, vector<1x32xf32>
    %27 = vector.broadcast %26 : vector<1x32xf32> to vector<8x32xf32>
    %28 = arith.addf %25, %27 : vector<8x32xf32>
    %cst_15 = arith.constant 0.000000e+00 : f32
    %29 = vector.broadcast %cst_15 : f32 to vector<8x32xf32>
    %30 = arith.maximumf %28, %29 : vector<8x32xf32>
    %c0_16 = arith.constant 0 : index
    %c0_17 = arith.constant 0 : index
    %31 = vector.load %arg4[%c0_16, %c0_17] : memref<8x32xf32, #tpu.memory_space<vmem>>, vector<8x32xf32>
    tpu.vector_store %arg4[%c0_16, %c0_17], %30 {strides = array<i32>} : memref<8x32xf32, #tpu.memory_space<vmem>>, vector<8x32xf32>,
    return
  }
}

</mosaic_0001>

<bundles_post_ra>
// kernel: tpu_custom_call.1
= control target key start
LH: loop header
LB: loop body
LE: loop exit
PB: predicated region body
PF: predicated region fallthrough
CT: control target
= control target key end

     0   :  { %9 = vsyncpa [#allocation3], 0  ;;  %s382_s0 = inlined_call_operand.hbm [shape: f32[8,32], index: 0, kind: input, shape index: {}]   ;;  %s383_s1 = inlined_call_operand.hbm [shape: f32[32,32], index: 1, kind: input, shape index: {}]   ;;  %s384_s2 = inlined_call_operand.hbm [shape: f32[2,32], index: 2, kind: input, shape index: {}]   ;;  %s385_s3 = inlined_call_operand.hbm [shape: f32[32,32], index: 3, kind: input, shape index: {}]   ;;  %s386_s4 = inlined_call_operand.hbm [shape: f32[8,32], index: 4, kind: output, shape index: {}]  }
   0x1   :  { %10 = vsyncpa [#allocation6], 0 }
   0x2   :  { %11 = vsyncpa [#allocation9], 0  ;;  %s28_s17 = sshll.u32 %s383_s1, 4  ;;  %s29_s17 = int_to_ptr.hbm [resolvable:$true] %s28_s17 }
   0x3   :  { %12 = vsyncpa [#allocation4], 0  ;;  %s330_s18 = smov [#allocation5]   ;;  %s18_s22 = sshll.u32 %s382_s0, 4  ;;  %s19_s22 = int_to_ptr.hbm [resolvable:$true] %s18_s22 }
   0x4   :  { %s30_s19 = sshll.u32 %s330_s18, 4  ;;  %s331_s23 = smov 128   ;;  %s31_s19 = int_to_ptr.vmem [resolvable:$true] %s30_s19 }
   0x5   :  { %s332_s24 = smov 8   ;;  %s333_s25 = smov [#allocation2]  }
   0x6   :  { %36 = dma.hbm_to_vmem [thread:$0]  %s29_s17, 512, %s31_s19, [#allocation6], %s331_s23, %s331_s23, %s332_s24  }
   0x7   :  { %s20_s26 = sshll.u32 %s333_s25, 4  ;;  %s42_s29 = sshll.u32 %s384_s2, 4  ;;  %s21_s26 = int_to_ptr.vmem [resolvable:$true] %s20_s26  ;;  %s43_s29 = int_to_ptr.hbm [resolvable:$true] %s42_s29 }
   0x8   :  { %23 = dma.hbm_to_vmem [thread:$0]  %s19_s22, 128, %s21_s26, [#allocation3]  }
   0x9   :  { %s52_s5 = sshll.u32 %s385_s3, 4  ;;  %s334_s6 = smov [#allocation7]   ;;  %s53_s5 = int_to_ptr.hbm [resolvable:$true] %s52_s5 }
   0xa   :  { %s44_s7 = sshll.u32 %s334_s6, 4  ;;  %s335_s0 = smov [#allocation8]   ;;  %s45_s7 = int_to_ptr.vmem [resolvable:$true] %s44_s7 }
   0xb   :  { %47 = dma.hbm_to_vmem [thread:$0]  %s43_s29, 32, %s45_s7, [#allocation6]  }
   0xc   :  { %s54_s8 = sshll.u32 %s335_s0, 4  ;;  %s55_s8 = int_to_ptr.vmem [resolvable:$true] %s54_s8 }
   0xd   :  { %60 = dma.hbm_to_vmem [thread:$0]  %s53_s5, 512, %s55_s8, [#allocation9], %s331_s23, %s331_s23, %s332_s24  }
   0xe   :  { %322 = dma.done.wait [#allocation3], 128  }
   0xf   :  { %323 = vsyncadd [#allocation3], 4294967168 }
  0x10   :  { %324 = dma.done.wait [#allocation6], 544  }
  0x11   :  { %325 = vsyncadd [#allocation6], 4294966752 }
  0x12   :  { %326 = dma.done.wait [#allocation9], 512  }
  0x13   :  { %327 = vsyncadd [#allocation9], 4294966784  ;;  %vm78_vm0 = vcmask 261120   ;;  %v112_v0 = vld [vmem:[#allocation5 + $0x18] sm:$0xff]  ;;  %v111_v1 = vld [vmem:[#allocation5 + $0x10] sm:$0xff]  ;;  %s336_s2 = smov [#allocation10]  }
  0x14   :  { %130 = vmatpush.msra.mxu0 %v112_v0  ;;  %v77_v2 = vld [vmem:[#allocation2] sm:$0xff]  ;;  %v110_v3 = vld [vmem:[#allocation5 + $0x8] sm:$0xff]  ;;  %v109_v6 = vld [vmem:[#allocation5] sm:$0xff]  ;;  %s175_s3 = sshll.u32 %s336_s2, 4  ;;  %s177_s11 = sshll.u32 %s386_s4, 4  ;;  %s176_s3 = int_to_ptr.vmem [resolvable:$true] %s175_s3  ;;  %s178_s11 = int_to_ptr.hbm [resolvable:$true] %s177_s11 }
  0x15   :  { %v79_v4 = vsel %vm78_vm0, %v77_v2, 0.0  ;;  %v142_v19 = vld [vmem:[#allocation8 + $0x18] sm:$0xff]  ;;  %v141_v33 = vld [vmem:[#allocation8 + $0x10] sm:$0xff]  ;;  %v140_v34 = vld [vmem:[#allocation8 + $0x8] sm:$0xff] }
  0x16   :  { %131 = vmatpush.msra.mxu0 %v111_v1  ;;  %v80_v5 = vrot.slane %v79_v4, 4  ;;  %160 = vmatpush.msra.mxu1 %v142_v19  ;;  %v139_v35 = vld [vmem:[#allocation8] sm:$0xff]  ;;  %v198_v36 = vld [vmem:[#allocation7] ss:$0 sm:$0xff]  ;;  %v199_v40 = vld [vmem:[#allocation7 + $0x1] ss:$0 sm:$0xff] }
  0x18   :  { %132 = vmatpush.msra.mxu0 %v110_v3  ;;  %v81_v7 = vadd.f32 %v80_v5, %v79_v4  ;;  %161 = vmatpush.msra.mxu1 %v141_v33 }
  0x1a   :  { %133 = vmatpush.msra.mxu0 %v109_v6  ;;  %v82_v8 = vrot.slane %v81_v7, 2  ;;  %162 = vmatpush.msra.mxu1 %v140_v34 }
  0x1c   :  { %v83_v9 = vadd.f32 %v82_v8, %v81_v7  ;;  %163 = vmatpush.msra.mxu1 %v139_v35 }
  0x1e   :  { %v84_v10 = vrot.slane %v83_v9, 1 }
  0x20   :  { %v85_v11 = vadd.f32 %v84_v10, %v83_v9 }
  0x22   :  { %v86_v12 = vmul.f32 0.125, %v85_v11 }
  0x24   :  { %v87_v13 = vsub.f32 %v77_v2, %v86_v12 }
  0x26   :  { %v88_v14 = vmul.f32 %v87_v13, %v87_v13 }
  0x28   :  { %v89_v15 = vsel %vm78_vm0, %v88_v14, 0.0 }
  0x29   :  { %v90_v16 = vrot.slane %v89_v15, 4 }
  0x2b   :  { %v91_v17 = vadd.f32 %v90_v16, %v89_v15 }
  0x2d   :  { %v92_v18 = vrot.slane %v91_v17, 2 }
  0x2f   :  { %v93_v20 = vadd.f32 %v92_v18, %v91_v17 }
  0x31   :  { %v94_v21 = vrot.slane %v93_v20, 1 }
  0x33   :  { %v95_v22 = vadd.f32 %v94_v21, %v93_v20 }
  0x35   :  { %v96_v23 = vmul.f32 0.125, %v95_v22 }
  0x37   :  { %v97_v24 = vadd.f32 1e-05, %v96_v23 }
  0x39   :  { %200 = vrsqrt.f32 %v97_v24  ;;  %vm104_vm1 = vweird.f32 %v97_v24 }
  0x3f   :  { %v201_v25 = vpop.eup %200 }
  0x40   :  { %v99_v26 = vmul.f32 %v201_v25, %v97_v24  ;;  %vm105_vm2 = vweird.f32 %v201_v25 }
  0x41   :  { %vm106_vm3 = vmor %vm104_vm1, %vm105_vm2 }
  0x42   :  { %v100_v27 = vmul.f32 %v201_v25, %v99_v26 }
  0x44   :  { %v101_v28 = vmul.f32 0.5, %v100_v27 }
  0x46   :  { %v102_v29 = vsub.f32 1.5, %v101_v28 }
  0x48   :  { %v103_v30 = vmul.f32 %v201_v25, %v102_v29 }
  0x4a   :  { %v107_v31 = vsel %vm106_vm3, %v201_v25, %v103_v30 }
  0x4b   :  { %v108_v32 = vmul.f32 %v107_v31, %v87_v13 }
  0x4d   :  { %189 = vmatmul.msk.f32.vlgmr.msra.gmra.mxu0 %vm78_vm0, %v108_v32 }
  0xca   :  { %v135_v37 = vpop.f32.mrf.mxu0 }
  0xcb   :  { %v136_v38 = vadd.f32 %v198_v36, %v135_v37 }
  0xcd   :  { %v138_v39 = vmax.f32 %v136_v38, 0.0 }
  0xcf   :  { %190 = vmatmul.msk.f32.vlgmr.msra.gmra.mxu1 %vm78_vm0, %v138_v39 }
 0x14c   :  { %v165_v41 = vpop.f32.mrf.mxu1 }
 0x14d   :  { %v166_v42 = vadd.f32 %v199_v40, %v165_v41 }
 0x14f   :  { %v168_v43 = vmax.f32 %v166_v42, 0.0 }
 0x151   :  { %169 = vst.msk [vmem:[#allocation10] sm:$0xff] %vm78_vm0, %v168_v43 }
 0x152   :  { %180 = dma.vmem_to_hbm [thread:$0]  %s176_s3, 128, %s178_s11, [#allocation4]  }
 0x153   :  { %328 = dma.done.wait [#allocation4], 128  }
 0x154   :  { %329 = vsyncadd [#allocation4], 4294967168 }
 0x155   :  { %185 = vsyncpa [#allocation3], 1 }
 0x156   :  { %186 = vsyncpa [#allocation6], 1 }
 0x157   :  { %187 = vsyncpa [#allocation9], 1 }
 0x158   :  { %188 = vsyncpa [#allocation4], 1 }

</bundles_post_ra>
